<compile_context>
chip_gen: v7x
topology: tpu7x:2x2x1
jax: 0.10.0
libtpu: 0.0.40
codegen_flags: <defaults>
</compile_context>

<pallas_src>
import functools

import jax
import jax.numpy as jnp
from jax.experimental import pallas as pl
from jax.experimental.pallas import tpu as pltpu

# Hard gate for the explicit-kernel variant. Keep False in production so the
# standalone custom call can never end up on the hot path.
SCALAR_DEBUG_KERNEL = False


def _scalar_copy_kernel(c_ref, o_ref):
    # Single 32-bit value on the scalar (SMEM) path: one sld + one sst.
    o_ref[0] = c_ref[0]


def scalar_forward(constant_param: jax.Array) -> jax.Array:
    """Production path for Scalar.forward(): pure identity return.

    Zero launch / DMA cost; lets XLA fuse the scalar into its consumer.
    """
    return constant_param


@jax.jit
def _scalar_forward_pallas_jit(constant_param: jax.Array) -> jax.Array:
    """Debug/test-only explicit-kernel variant of Scalar.forward().

    Under jit the reshape(1)/reshape(()) fold to metadata; only the single
    custom call remains. No grid, no aliasing, SMEM in/out, dtype follows
    the parameter.
    """
    c1d = constant_param.reshape(1)  # 1-D scalar; SMEM pads to one word only.
    out = pl.pallas_call(
        _scalar_copy_kernel,
        out_shape=jax.ShapeDtypeStruct((1,), constant_param.dtype),
        in_specs=[pl.BlockSpec(memory_space=pltpu.SMEM)],
        out_specs=pl.BlockSpec(memory_space=pltpu.SMEM),
    )(c1d)
    # Back to 0-d scalar, matching nn.Parameter(torch.tensor(init_value)).
    return out.reshape(())


def scalar_forward_pallas(constant_param: jax.Array) -> jax.Array:
    """Gated wrapper: falls back to the kernel-free path unless debugging."""
    if not SCALAR_DEBUG_KERNEL:
        return scalar_forward(constant_param)
    return _scalar_forward_pallas_jit(constant_param)


if __name__ == "__main__":
    # Deterministic parameter initialization (mirrors __init__(init_value)).
    key = jax.random.PRNGKey(0)
    init_value = jax.random.uniform(key, (), dtype=jnp.float32)
    constant = jnp.asarray(init_value, dtype=jnp.float32)  # the parameter (0-d f32)

    # Production hot path: no kernel launch at all (identity return).
    fast = scalar_forward(constant)
    fast = jax.block_until_ready(fast)

    # Gated path resolves to the identity return when the debug flag is off.
    gated = jax.block_until_ready(scalar_forward_pallas(constant))

    # Exercise the explicit Pallas kernel once (test/debug only), under jit.
    via_kernel = _scalar_forward_pallas_jit(constant)
    via_kernel = jax.block_until_ready(via_kernel)

    # Sanity checks: forward() must return exactly the parameter value.
    assert fast.shape == () and fast.dtype == jnp.float32
    assert gated.shape == () and gated.dtype == jnp.float32
    assert via_kernel.shape == () and via_kernel.dtype == jnp.float32
    assert bool(jnp.array_equal(fast, constant))
    assert bool(jnp.array_equal(gated, constant))
    assert bool(jnp.array_equal(via_kernel, constant))

    print("KERNEL_OK")
</pallas_src>

<mosaic_0001>
module attributes {stable_mosaic.version = 11 : i64} {
  func.func @_scalar_copy_kernel(%arg0: memref<1xf32, #tpu.memory_space<smem>>, %arg1: memref<1xf32, #tpu.memory_space<smem>>) attributes {dimension_semantics = [], scalar_prefetch = 0 : i64, scratch_operands = 0 : i64, tpu.core_type = #tpu.core_type<tc>} {
    %c0 = arith.constant 0 : index
    %0 = memref.load %arg0[%c0] : memref<1xf32, #tpu.memory_space<smem>>
    %c0_0 = arith.constant 0 : index
    %1 = memref.load %arg1[%c0_0] : memref<1xf32, #tpu.memory_space<smem>>
    memref.store %0, %arg1[%c0_0] : memref<1xf32, #tpu.memory_space<smem>>
    return
  }
}

</mosaic_0001>

<bundles_post_ra>
// kernel: _scalar_forward_pallas_jit.1
= control target key start
LH: loop header
LB: loop body
LE: loop exit
PB: predicated region body
PF: predicated region fallthrough
CT: control target
= control target key end

     0   :  { %7 = vsyncpa [#allocation4], 0  ;;  %s65_s0 = inlined_call_operand.<no memory space> [shape: f32[1], index: 0, kind: input, shape index: {}]   ;;  %s66_s1 = inlined_call_operand.hbm [shape: f32[1], index: 1, kind: output, shape index: {}]  }
   0x1   :  { %12 = sst [smem:[#allocation3]] %s65_s0  ;;  %s27_s10 = scalar_lea.hbm %s66_s1, 16 }
   0x2   :  { %p28_p0 = scmp.ne.s32.totalorder %s66_s1, %s27_s10  ;;  %p31_p1 = scmp.lt.u32.totalorder %s27_s10, %s66_s1 }
   0x4   :  { %p33_p2 = pnand %p31_p1, %p28_p0 }
   0x6   :  { %36 = shalt.err (!%p33_p2)
}
   0x7   :  { %s39_s15 = smov [#allocation3]  }
   0x8   :  { %20 = dma.smem_to_hbm %s39_s15, 16, %s66_s1, [#allocation4]  }
   0x9   :  { %37 = dma.done.wait [#allocation4], 16  }
   0xa   :  { %38 = vsyncadd [#allocation4], 4294967280 }
   0xb   :  { %24 = sfence }
   0xc   :  { %25 = vsyncpa [#allocation4], 1 }

</bundles_post_ra>
